<compile_context>
chip_gen: v7x
topology: tpu7x:2x2x1
jax: 0.10.0
libtpu: 0.0.40
codegen_flags: <defaults>
</compile_context>

<pallas_src>
import functools

import jax
import jax.numpy as jnp
import numpy as np
from jax.experimental import pallas as pl
from jax.experimental.pallas import tpu as pltpu

EPS = 1e-5


# ---------------------------------------------------------------------------
# Kernels
# ---------------------------------------------------------------------------
def bn1_stats_kernel(x_ref, s_ref, ss_ref):
    """Pass 1: accumulate per-channel sum / sum-of-squares of x over N tiles."""
    @pl.when(pl.program_id(0) == 0)
    def _():
        s_ref[...] = jnp.zeros_like(s_ref)
        ss_ref[...] = jnp.zeros_like(ss_ref)

    x = x_ref[...]                                        # (Cin_p, TN)
    s_ref[...] += jnp.sum(x, axis=1, keepdims=True)
    ss_ref[...] += jnp.sum(x * x, axis=1, keepdims=True)


def bn2_stats_kernel(x_ref, sc1_ref, sh1_ref, w1_ref, b1_ref, s_ref, ss_ref):
    """Pass 2: recompute h = relu(BN1(x)), y1 = w1 @ h + b1 per tile and
    accumulate per-channel sum / sum-of-squares of y1."""
    @pl.when(pl.program_id(0) == 0)
    def _():
        s_ref[...] = jnp.zeros_like(s_ref)
        ss_ref[...] = jnp.zeros_like(ss_ref)

    h = jnp.maximum(x_ref[...] * sc1_ref[...] + sh1_ref[...], 0.0)    # (Cin_p, TN)
    y1 = jnp.dot(w1_ref[...], h,
                 preferred_element_type=jnp.float32) + b1_ref[...]    # (Cm_p, TN)
    s_ref[...] += jnp.sum(y1, axis=1, keepdims=True)
    ss_ref[...] += jnp.sum(y1 * y1, axis=1, keepdims=True)


def apply_kernel(x_ref, sc1_ref, sh1_ref, w1_ref, b1_ref,
                 sc2_ref, sh2_ref, w2f_ref, b2_ref,
                 out_ref, stack_ref, *, L):
    """Pass 3: recompute h / y1 / h2 per tile and emit y2 for that tile via a
    single fused 3-tap conv matmul."""
    h = jnp.maximum(x_ref[...] * sc1_ref[...] + sh1_ref[...], 0.0)    # (Cin_p, TN)
    y1 = jnp.dot(w1_ref[...], h,
                 preferred_element_type=jnp.float32) + b1_ref[...]    # (Cm_p, TN)
    h2 = jnp.maximum(y1 * sc2_ref[...] + sh2_ref[...], 0.0)           # (Cm_p, TN)

    cm, tn = h2.shape
    # Position within a sample.  TN is a multiple of L, so the pattern is
    # tile-invariant and sample boundaries never cross a tile edge.
    pos = jax.lax.broadcasted_iota(jnp.int32, (cm, tn), 1) % L
    left = jnp.where(pos != 0, pltpu.roll(h2, 1, 1), 0.0)             # h2[:, l-1]
    right = jnp.where(pos != L - 1, pltpu.roll(h2, tn - 1, 1), 0.0)   # h2[:, l+1]

    # Write the taps straight into the (3*Cm_p, TN) VMEM scratch (no concat
    # copy), then ONE MXU matmul over the 3x-deep channel contraction.
    stack_ref[0:cm, :] = left
    stack_ref[cm:2 * cm, :] = h2
    stack_ref[2 * cm:3 * cm, :] = right
    out_ref[...] = jnp.dot(w2f_ref[...], stack_ref[...],
                           preferred_element_type=jnp.float32) + b2_ref[...]


# ---------------------------------------------------------------------------
# Wrapper
# ---------------------------------------------------------------------------
def _round_up(v, m):
    return (v + m - 1) // m * m


def _pad_rows(a, rows):
    return jnp.pad(a, ((0, rows - a.shape[0]),) + ((0, 0),) * (a.ndim - 1))


def _pick_tile(N, L, max_tile=2048):
    """Largest N-tile that is a multiple of both L and 128 and divides N,
    preferring tiles <= max_tile.  Falls back to a single full-width tile
    (a block equal to the full array dim is always a legal block shape)."""
    b = N // L
    cands = [t * L for t in range(1, b + 1)
             if b % t == 0 and (t * L) % 128 == 0]
    if not cands:
        return N
    under = [c for c in cands if c <= max_tile]
    return max(under) if under else min(cands)


def dense_layer(x, p, *, max_tile=2048):
    B, Cin, L = x.shape
    Cm = p['w1'].shape[0]
    Cout = p['w2'].shape[0]
    N = B * L
    Cin_p = _round_up(Cin, 8)
    Cm_p = _round_up(Cm, 8)

    xf = x.astype(jnp.float32)

    # Lane-dense (C, B*L) view of the input, channel-padded to a sublane
    # multiple.  (Chained DenseNet-style use would keep this layout between
    # layers and fuse the final concat instead of round-tripping through NCL.)
    x2 = _pad_rows(jnp.transpose(xf, (1, 0, 2)).reshape(Cin, N), Cin_p)

    # Zero-padded parameters: padded channels contribute exactly zero.
    g1 = _pad_rows(p['g1'], Cin_p)
    be1 = _pad_rows(p['be1'], Cin_p)
    w1 = jnp.pad(p['w1'], ((0, Cm_p - Cm), (0, Cin_p - Cin)))
    b1 = _pad_rows(p['b1'], Cm_p)
    g2 = _pad_rows(p['g2'], Cm_p)
    be2 = _pad_rows(p['be2'], Cm_p)
    # w2: (Cout, Cm, 3) -> (Cout, 3*Cm_p), tap order [left, center, right]
    # matching the stacked activations.
    w2p = jnp.pad(p['w2'], ((0, 0), (0, Cm_p - Cm), (0, 0)))
    w2f = jnp.concatenate([w2p[:, :, 0], w2p[:, :, 1], w2p[:, :, 2]], axis=1)
    b2 = p['b2']

    TN = _pick_tile(N, L, max_tile)
    nt = N // TN
    inv_n = jnp.float32(1.0 / N)

    # Rough per-tile live set (double-buffered in/out tiles, stack scratch,
    # intermediates), 4x headroom, clamped to [16, 32] MiB (v7x-safe).
    live = 4 * TN * (3 * Cin_p + 2 * Cout + 6 * Cm_p)
    vlim = int(min(max(4 * live, 16 << 20), 32 << 20))

    x_spec = pl.BlockSpec((Cin_p, TN), lambda i: (0, i))

    def const_spec(a):
        return pl.BlockSpec(a.shape, lambda i: (0, 0))

    # ---- pass 1: BN1 statistics -------------------------------------------
    s1, ss1 = pl.pallas_call(
        bn1_stats_kernel,
        out_shape=(jax.ShapeDtypeStruct((Cin_p, 1), jnp.float32),
                   jax.ShapeDtypeStruct((Cin_p, 1), jnp.float32)),
        grid_spec=pltpu.PrefetchScalarGridSpec(
            num_scalar_prefetch=0, grid=(nt,),
            in_specs=[x_spec],
            out_specs=(pl.BlockSpec((Cin_p, 1), lambda i: (0, 0)),
                       pl.BlockSpec((Cin_p, 1), lambda i: (0, 0)))),
        compiler_params=pltpu.CompilerParams(
            dimension_semantics=("arbitrary",), vmem_limit_bytes=vlim),
        cost_estimate=pl.CostEstimate(
            flops=3 * N * Cin_p, transcendentals=0,
            bytes_accessed=4 * N * Cin_p),
    )(x2)

    mu1 = s1 * inv_n
    var1 = ss1 * inv_n - mu1 * mu1
    scale1 = g1 * jax.lax.rsqrt(var1 + EPS)
    shift1 = be1 - mu1 * scale1

    # ---- pass 2: BN2 statistics (recompute h / y1 per tile) ----------------
    s2, ss2 = pl.pallas_call(
        bn2_stats_kernel,
        out_shape=(jax.ShapeDtypeStruct((Cm_p, 1), jnp.float32),
                   jax.ShapeDtypeStruct((Cm_p, 1), jnp.float32)),
        grid_spec=pltpu.PrefetchScalarGridSpec(
            num_scalar_prefetch=0, grid=(nt,),
            in_specs=[x_spec, const_spec(scale1), const_spec(shift1),
                      const_spec(w1), const_spec(b1)],
            out_specs=(pl.BlockSpec((Cm_p, 1), lambda i: (0, 0)),
                       pl.BlockSpec((Cm_p, 1), lambda i: (0, 0)))),
        compiler_params=pltpu.CompilerParams(
            dimension_semantics=("arbitrary",), vmem_limit_bytes=vlim),
        cost_estimate=pl.CostEstimate(
            flops=N * (2 * Cin_p * Cm_p + 3 * Cin_p + 5 * Cm_p),
            transcendentals=0,
            bytes_accessed=4 * N * Cin_p),
    )(x2, scale1, shift1, w1, b1)

    mu2 = s2 * inv_n
    var2 = ss2 * inv_n - mu2 * mu2
    scale2 = g2 * jax.lax.rsqrt(var2 + EPS)
    shift2 = be2 - mu2 * scale2

    # ---- pass 3: apply + fused k=3 conv, tiled & parallel over N -----------
    y2 = pl.pallas_call(
        functools.partial(apply_kernel, L=L),
        out_shape=jax.ShapeDtypeStruct((Cout, N), jnp.float32),
        grid_spec=pltpu.PrefetchScalarGridSpec(
            num_scalar_prefetch=0, grid=(nt,),
            in_specs=[x_spec, const_spec(scale1), const_spec(shift1),
                      const_spec(w1), const_spec(b1),
                      const_spec(scale2), const_spec(shift2),
                      const_spec(w2f), const_spec(b2)],
            out_specs=pl.BlockSpec((Cout, TN), lambda i: (0, i)),
            scratch_shapes=[pltpu.VMEM((3 * Cm_p, TN), jnp.float32)]),
        compiler_params=pltpu.CompilerParams(
            dimension_semantics=("parallel",), vmem_limit_bytes=vlim),
        cost_estimate=pl.CostEstimate(
            flops=N * (2 * Cin_p * Cm_p + 6 * Cm_p * Cout
                       + 3 * Cin_p + 7 * Cm_p + Cout),
            transcendentals=0,
            bytes_accessed=4 * N * (Cin_p + Cout)),
    )(x2, scale1, shift1, w1, b1, scale2, shift2, w2f, b2)

    # Back to NCL and concatenate with the passthrough input in the wrapper
    # (x never round-trips through the kernel output).
    y2 = jnp.transpose(y2.reshape(Cout, B, L), (1, 0, 2))
    return jnp.concatenate([xf, y2], axis=1)


# ---------------------------------------------------------------------------
# Pure-JAX reference mirroring the PyTorch module (training-mode BatchNorm)
# ---------------------------------------------------------------------------
def dense_layer_ref(x, p):
    mu1 = x.mean(axis=(0, 2), keepdims=True)
    var1 = ((x - mu1) ** 2).mean(axis=(0, 2), keepdims=True)
    h = (x - mu1) * jax.lax.rsqrt(var1 + EPS) * p['g1'][None] + p['be1'][None]
    h = jnp.maximum(h, 0.0)
    y1 = jnp.einsum('mc,bcl->bml', p['w1'], h) + p['b1'][None]
    mu2 = y1.mean(axis=(0, 2), keepdims=True)
    var2 = ((y1 - mu2) ** 2).mean(axis=(0, 2), keepdims=True)
    h2 = (y1 - mu2) * jax.lax.rsqrt(var2 + EPS) * p['g2'][None] + p['be2'][None]
    h2 = jnp.maximum(h2, 0.0)
    L = h2.shape[-1]
    h2p = jnp.pad(h2, ((0, 0), (0, 0), (1, 1)))
    y2 = sum(jnp.einsum('om,bml->bol', p['w2'][:, :, k], h2p[:, :, k:k + L])
             for k in range(3)) + p['b2'][None]
    return jnp.concatenate([x, y2], axis=1)


def init_params(key, in_channels, middle_channels=6, out_channels=32):
    ks = jax.random.split(key, 8)
    return {
        # BN / bias params stored as (C, 1) so they broadcast over lanes.
        'g1':  1.0 + 0.1 * jax.random.normal(ks[0], (in_channels, 1), jnp.float32),
        'be1': 0.1 * jax.random.normal(ks[1], (in_channels, 1), jnp.float32),
        'w1':  0.3 * jax.random.normal(ks[2], (middle_channels, in_channels), jnp.float32),
        'b1':  0.1 * jax.random.normal(ks[3], (middle_channels, 1), jnp.float32),
        'g2':  1.0 + 0.1 * jax.random.normal(ks[4], (middle_channels, 1), jnp.float32),
        'be2': 0.1 * jax.random.normal(ks[5], (middle_channels, 1), jnp.float32),
        'w2':  0.3 * jax.random.normal(ks[6], (out_channels, middle_channels, 3), jnp.float32),
        'b2':  0.1 * jax.random.normal(ks[7], (out_channels, 1), jnp.float32),
    }


if __name__ == "__main__":
    key = jax.random.PRNGKey(0)
    k_x, k_p, k_x2 = jax.random.split(key, 3)

    # Small config matching the module defaults (single-tile fallback path).
    B, Cin, Cm, Cout, L = 2, 4, 6, 32, 16
    x = jax.random.normal(k_x, (B, Cin, L), jnp.float32)
    params = init_params(k_p, Cin, Cm, Cout)

    out = jax.block_until_ready(dense_layer(x, params))
    ref = jax.block_until_ready(dense_layer_ref(x, params))
    assert out.shape == (B, Cin + Cout, L), out.shape
    np.testing.assert_allclose(np.asarray(out), np.asarray(ref),
                               rtol=1e-4, atol=1e-4)

    # Slightly larger config that exercises the tiled grid (2 tiles of 512
    # lanes, stats accumulated across grid steps).
    B2, L2 = 8, 128
    x_big = jax.random.normal(k_x2, (B2, Cin, L2), jnp.float32)
    out_big = jax.block_until_ready(dense_layer(x_big, params, max_tile=512))
    ref_big = jax.block_until_ready(dense_layer_ref(x_big, params))
    assert out_big.shape == (B2, Cin + Cout, L2), out_big.shape
    np.testing.assert_allclose(np.asarray(out_big), np.asarray(ref_big),
                               rtol=1e-3, atol=1e-3)

    print("KERNEL_OK")
</pallas_src>

<mosaic_0001>
module attributes {stable_mosaic.version = 11 : i64} {
  func.func @bn1_stats_kernel(%arg0: i32, %arg1: memref<8x32xf32, #tpu.memory_space<vmem>>, %arg2: memref<8x1xf32, #tpu.memory_space<vmem>>, %arg3: memref<8x1xf32, #tpu.memory_space<vmem>>) attributes {dimension_semantics = [#tpu.dimension_semantics<arbitrary>], iteration_bounds = array<i64: 1>, scalar_prefetch = 0 : i64, scratch_operands = 0 : i64, tpu.core_type = #tpu.core_type<tc>, window_params = [{transform_indices = @transform_0, window_bounds = array<i64: 8, 32>}, {pipeline_mode = #tpu.pipeline_mode<synchronous>, transform_indices = @transform_1, window_bounds = array<i64: 8, 1>}, {pipeline_mode = #tpu.pipeline_mode<synchronous>, transform_indices = @transform_2, window_bounds = array<i64: 8, 1>}]} {
    %c0_i32 = arith.constant 0 : i32
    %0 = arith.cmpi eq, %arg0, %c0_i32 : i32
    %1 = arith.extui %0 : i1 to i32
    %c0_i32_0 = arith.constant 0 : i32
    %2 = arith.cmpi ne, %1, %c0_i32_0 : i32
    scf.if %2 {
      %cst_11 = arith.constant 0.000000e+00 : f32
      %15 = vector.broadcast %cst_11 : f32 to vector<8x1xf32>
      %c0_12 = arith.constant 0 : index
      %c0_13 = arith.constant 0 : index
      %16 = vector.load %arg2[%c0_12, %c0_13] : memref<8x1xf32, #tpu.memory_space<vmem>>, vector<8x1xf32>
      tpu.vector_store %arg2[%c0_12, %c0_13], %15 {strides = array<i32>} : memref<8x1xf32, #tpu.memory_space<vmem>>, vector<8x1xf32>,
      %cst_14 = arith.constant 0.000000e+00 : f32
      %17 = vector.broadcast %cst_14 : f32 to vector<8x1xf32>
      %c0_15 = arith.constant 0 : index
      %c0_16 = arith.constant 0 : index
      %18 = vector.load %arg3[%c0_15, %c0_16] : memref<8x1xf32, #tpu.memory_space<vmem>>, vector<8x1xf32>
      tpu.vector_store %arg3[%c0_15, %c0_16], %17 {strides = array<i32>} : memref<8x1xf32, #tpu.memory_space<vmem>>, vector<8x1xf32>,
    } else {
    }
    %c0 = arith.constant 0 : index
    %c0_1 = arith.constant 0 : index
    %3 = vector.load %arg1[%c0, %c0_1] : memref<8x32xf32, #tpu.memory_space<vmem>>, vector<8x32xf32>
    %c0_2 = arith.constant 0 : index
    %c0_3 = arith.constant 0 : index
    %4 = vector.load %arg2[%c0_2, %c0_3] : memref<8x1xf32, #tpu.memory_space<vmem>>, vector<8x1xf32>
    %cst = arith.constant dense<0.000000e+00> : vector<8xf32>
    %5 = vector.multi_reduction <add>, %3, %cst [1] : vector<8x32xf32> to vector<8xf32>
    %6 = vector.shape_cast %5 : vector<8xf32> to vector<8x1xf32>
    %7 = arith.addf %4, %6 : vector<8x1xf32>
    %c0_4 = arith.constant 0 : index
    %c0_5 = arith.constant 0 : index
    %8 = vector.load %arg2[%c0_4, %c0_5] : memref<8x1xf32, #tpu.memory_space<vmem>>, vector<8x1xf32>
    tpu.vector_store %arg2[%c0_4, %c0_5], %7 {strides = array<i32>} : memref<8x1xf32, #tpu.memory_space<vmem>>, vector<8x1xf32>,
    %c0_6 = arith.constant 0 : index
    %c0_7 = arith.constant 0 : index
    %9 = vector.load %arg3[%c0_6, %c0_7] : memref<8x1xf32, #tpu.memory_space<vmem>>, vector<8x1xf32>
    %10 = arith.mulf %3, %3 : vector<8x32xf32>
    %cst_8 = arith.constant dense<0.000000e+00> : vector<8xf32>
    %11 = vector.multi_reduction <add>, %10, %cst_8 [1] : vector<8x32xf32> to vector<8xf32>
    %12 = vector.shape_cast %11 : vector<8xf32> to vector<8x1xf32>
    %13 = arith.addf %9, %12 : vector<8x1xf32>
    %c0_9 = arith.constant 0 : index
    %c0_10 = arith.constant 0 : index
    %14 = vector.load %arg3[%c0_9, %c0_10] : memref<8x1xf32, #tpu.memory_space<vmem>>, vector<8x1xf32>
    tpu.vector_store %arg3[%c0_9, %c0_10], %13 {strides = array<i32>} : memref<8x1xf32, #tpu.memory_space<vmem>>, vector<8x1xf32>,
    return
  }
  func.func @transform_0(%arg0: i32) -> (i32, i32) {
    %c0_i32 = arith.constant 0 : i32
    %c0_i32_0 = arith.constant 0 : i32
    return %c0_i32, %arg0 : i32, i32
  }
  func.func @transform_1(%arg0: i32) -> (i32, i32) {
    %c0_i32 = arith.constant 0 : i32
    %c0_i32_0 = arith.constant 0 : i32
    %c0_i32_1 = arith.constant 0 : i32
    return %c0_i32, %c0_i32_0 : i32, i32
  }
  func.func @transform_2(%arg0: i32) -> (i32, i32) {
    %c0_i32 = arith.constant 0 : i32
    %c0_i32_0 = arith.constant 0 : i32
    %c0_i32_1 = arith.constant 0 : i32
    return %c0_i32, %c0_i32_0 : i32, i32
  }
}

</mosaic_0001>

<bundles_post_ra>
// kernel: tpu_custom_call.1
= control target key start
LH: loop header
LB: loop body
LE: loop exit
PB: predicated region body
PF: predicated region fallthrough
CT: control target
= control target key end

     0   :  { %8 = vsyncpa [#allocation3], 0  ;;  %s80_s9 = smov [#allocation2]   ;;  %s131_s0 = inlined_call_operand.hbm [shape: f32[8,32], index: 0, kind: input, shape index: {}]   ;;  %s132_s1 = inlined_call_operand.vmem [shape: f32[8,1], index: 1, kind: output, shape index: {0}]   ;;  %s133_s2 = inlined_call_operand.vmem [shape: f32[8,1], index: 2, kind: output, shape index: {1}]  }
   0x1   :  { %s15_s10 = sshll.u32 %s80_s9, 4  ;;  %s56_s13 = scalar_lea.hbm %s131_s0, 128  ;;  %s16_s10 = int_to_ptr.vmem [resolvable:$true] %s15_s10 }
   0x2   :  { %p57_p0 = scmp.ne.s32.totalorder %s131_s0, %s56_s13  ;;  %p60_p1 = scmp.lt.u32.totalorder %s56_s13, %s131_s0 }
   0x4   :  { %p62_p2 = pnand %p60_p1, %p57_p0 }
   0x6   :  { %65 = shalt.err (!%p62_p2)
}
   0x7   :  { %s66_s18 = scalar_lea.vmem %s16_s10, 128  ;;  %p71_p4 = scmp.lt.s32.totalorder %s16_s10, %s16_s10 }
   0x8   :  { %p67_p3 = scmp.ne.s32.totalorder %s16_s10, %s66_s18  ;;  %p72_p5 = scmp.lt.s32.totalorder %s66_s18, %s66_s18 }
   0xa   :  { %p73_p6 = por %p72_p5, %p71_p4 }
   0xc   :  { %p74_p7 = pnand %p73_p6, %p67_p3 }
   0xe   :  { %77 = shalt.err (!%p74_p7)
}
   0xf   :  { %18 = dma.hbm_to_vmem [thread:$0]  %s131_s0, 128, %s16_s10, [#allocation3]  }
  0x10   :  { %78 = dma.done.wait [#allocation3], 128  }
  0x11   :  { %79 = vsyncadd [#allocation3], 4294967168  ;;  %vm26_vm0 = vcmask 7168   ;;  %v81_v0 = vmov 0.0   ;;  %vm31_vm1 = vcmask 261120   ;;  %v29_v1 = vld [vmem:[#allocation2] sm:$0xff] }
  0x12   :  { %27 = vst.msk [vmem:[%s132_s1] sm:$0xff] %vm26_vm0, %v81_v0  ;;  %28 = vst.msk [vmem:[%s133_s2] sm:$0xff] %vm26_vm0, %v81_v0  ;;  %v32_v2 = vsel %vm31_vm1, %v29_v1, 0.0  ;;  %v39_v3 = vmul.f32 %v29_v1, %v29_v1 }
  0x13   :  { %33 = vadd.xlane.f32.xlu0 %v32_v2 }
  0x14   :  { %v40_v4 = vsel %vm31_vm1, %v39_v3, 0.0 }
  0x17   :  { %41 = vadd.xlane.f32.xlu0 %v40_v4 }
  0x19   :  { %v30_v5 = vld [vmem:[%s132_s1] sm:$0xff] }
  0x1a   :  { %v38_v8 = vld [vmem:[%s133_s2] sm:$0xff] }
  0xa0   :  { %v34_v6 = vpop.xlane.xlu0 %33 }
  0xa1   :  { %v35_v7 = vadd.f32 %v34_v6, %v30_v5 }
  0xa3   :  { %37 = vst.msk [vmem:[%s132_s1] sm:$0xff] %vm26_vm0, %v35_v7 }
  0xa4   :  { %v42_v9 = vpop.xlane.xlu0 %41 }
  0xa5   :  { %v43_v10 = vadd.f32 %v42_v9, %v38_v8 }
  0xa7   :  { %44 = vst.msk [vmem:[%s133_s2] sm:$0xff] %vm26_vm0, %v43_v10 }
  0xa8   :  { %53 = vsyncpa [#allocation3], 1 }

</bundles_post_ra>
